<compile_context>
chip_gen: v7x
topology: tpu7x:2x2x1
jax: 0.10.0
libtpu: 0.0.40
codegen_flags: <defaults>
</compile_context>

<pallas_src>
import functools

import jax
import jax.numpy as jnp
from jax.experimental import pallas as pl
from jax.experimental.pallas import tpu as pltpu


def _actor_kernel(wc_ref, bc_ref, s_ref, eps_ref, out_ref):
    """One batch tile, feature-major (transposed) layout.

    wc_ref : [2A, S]   folded weight  (VMEM-resident across grid steps)
    bc_ref : [2A, 1]   folded bias    (resident)
    s_ref  : [S, TB]   states, batch on the lane axis
    eps_ref: [A, TB]   N(0,1) noise, batch on the lane axis
    out_ref: [A, TB]   sample = mu + softplus(sigma) * eps
    """
    A = out_ref.shape[0]

    # Single fused affine: [2A, TB] = [2A, S] @ [S, TB] + [2A, 1]
    heads = jnp.dot(wc_ref[...], s_ref[...],
                    preferred_element_type=jnp.float32) + bc_ref[...]

    # mu/sigma split along the sublane axis (cheap, vreg-row aligned for A=8).
    mu = heads[:A, :]
    sigma = heads[A:, :]

    out_ref[...] = mu + jax.nn.softplus(sigma) * eps_ref[...].astype(jnp.float32)


def _round_up(x, m):
    return -(-x // m) * m


@functools.partial(jax.jit, static_argnames=("stream_dtype",))
def proximal_actor_forward(s, packed_params, eps, *, stream_dtype=jnp.float32):
    """s: [B, s_dim] f32; eps: [B, a_dim] f32 standard-normal noise.

    Returns a sample of shape (1, B, a_dim), matching
    Normal(mu, softplus(sigma)).rsample(torch.Size((1,))).
    """
    wc_t, bc_t = packed_params                       # [2A, S] f32, [2A, 1] f32
    B, S = s.shape
    A2 = wc_t.shape[0]
    A = A2 // 2

    # Feature-major layout: batch on the lane axis (dense loads/stores).
    s_t = s.T.astype(stream_dtype)                   # [S, B]
    eps_t = eps.T.astype(stream_dtype)               # [A, B]
    wc = wc_t.astype(stream_dtype)                   # [2A, S]
    bc = bc_t.astype(jnp.float32)                    # [2A, 1]

    # Batch tile selection:
    #  - tiny/moderate B: one full block, no grid bookkeeping;
    #  - large B: lane-dense tiles (multiple of 128), capped at 8192 columns
    #    (~a few MiB double-buffered), and >= 2 grid steps for v7x megacore.
    if B < 256:
        TB = B
    else:
        TB = min(8192, max(128, _round_up(-(-B // 2), 128)))
    grid = (pl.cdiv(B, TB),)

    bytes_per = jnp.dtype(stream_dtype).itemsize
    cost = pl.CostEstimate(
        flops=2 * B * S * A2,                        # single folded matmul
        transcendentals=B * A,                       # softplus
        bytes_accessed=bytes_per * (B * S + S * A2 + B * A)
        + 4 * (A2 + B * A),                          # f32 bias + f32 output
    )

    out_t = pl.pallas_call(
        _actor_kernel,
        out_shape=jax.ShapeDtypeStruct((A, B), jnp.float32),
        grid=grid,
        in_specs=[
            pl.BlockSpec((A2, S), lambda i: (0, 0)),     # W_c^T (resident)
            pl.BlockSpec((A2, 1), lambda i: (0, 0)),     # b_c^T (resident)
            pl.BlockSpec((S, TB), lambda i: (0, i)),     # s^T   (batch-tiled)
            pl.BlockSpec((A, TB), lambda i: (0, i)),     # eps^T (batch-tiled)
        ],
        out_specs=pl.BlockSpec((A, TB), lambda i: (0, i)),
        compiler_params=pltpu.CompilerParams(
            dimension_semantics=("parallel",)),          # megacore split on v7x
        cost_estimate=cost,
    )(wc, bc, s_t, eps_t)

    # Back to [B, A], then the leading rsample((1,)) axis.
    return out_t.T.reshape(1, B, A)


def init_params(key, s_dim, a_dim, hidden):
    """Deterministic init mirroring nn.Linear's U(-1/sqrt(fan_in), 1/sqrt(fan_in)).

    Weights are stored transposed ([in, out]); biases as [1, out].
    """
    k1, k2, k3, k4, k5, k6 = jax.random.split(key, 6)

    def lin(kw, kb, fan_in, fan_out):
        bound = 1.0 / jnp.sqrt(fan_in)
        w = jax.random.uniform(kw, (fan_in, fan_out), jnp.float32, -bound, bound)
        b = jax.random.uniform(kb, (1, fan_out), jnp.float32, -bound, bound)
        return w, b

    w1, b1 = lin(k1, k2, s_dim, hidden)
    wmu, bmu = lin(k3, k4, hidden, a_dim)
    wsig, bsig = lin(k5, k6, hidden, a_dim)
    return (w1, b1, wmu, bmu, wsig, bsig)


def pack_params(params):
    """Fold the activation-free two-layer chain into one affine map.

    mu    = (2*l1) @ wmu + bmu = s @ (w1 @ (2*wmu)) + (b1 @ (2*wmu) + bmu)
    sigma =      l1 @ wsig + bsig = s @ (w1 @ wsig)  + (b1 @ wsig  + bsig)
    Returned transposed ([2A, S], [2A, 1]) for the feature-major kernel layout.
    """
    w1, b1, wmu, bmu, wsig, bsig = params
    w_heads = jnp.concatenate([2.0 * wmu, wsig], axis=1)     # [H, 2A]
    b_heads = jnp.concatenate([bmu, bsig], axis=1)           # [1, 2A]
    w_c = w1 @ w_heads                                        # [S, 2A]
    b_c = b1 @ w_heads + b_heads                              # [1, 2A]
    return (w_c.T, b_c.T)                                     # ([2A, S], [2A, 1])


if __name__ == "__main__":
    # Small shapes consistent with the module: Linear(s_dim -> H), two heads H -> a_dim.
    B, S_DIM, HIDDEN, A_DIM = 8, 32, 32, 8

    key = jax.random.PRNGKey(0)
    k_s, k_eps, k_params = jax.random.split(key, 3)

    s = jax.random.normal(k_s, (B, S_DIM), dtype=jnp.float32)
    # TODO(synk): PyTorch draws eps via torch's global RNG inside rsample; here the
    # standard-normal noise is generated with jax.random and passed into the kernel.
    eps = jax.random.normal(k_eps, (B, A_DIM), dtype=jnp.float32)

    params = init_params(k_params, S_DIM, A_DIM, HIDDEN)
    packed = pack_params(params)

    out = proximal_actor_forward(s, packed, eps)
    jax.block_until_ready(out)

    # Reference check in plain JAX using the ORIGINAL (unfused) formulation,
    # which also verifies that the affine fold (and the 2x fold into wmu)
    # preserves semantics up to f32 rounding order.
    w1, b1, wmu, bmu, wsig, bsig = params
    l1 = s @ w1 + b1
    mu = (2.0 * l1) @ wmu + bmu
    sigma = l1 @ wsig + bsig
    ref = (mu + jax.nn.softplus(sigma) * eps).reshape(1, B, A_DIM)

    assert out.shape == (1, B, A_DIM)
    assert jnp.allclose(out, ref, atol=1e-4, rtol=1e-4)

    print("KERNEL_OK")
</pallas_src>

<mosaic_0001>
module attributes {stable_mosaic.version = 11 : i64} {
  func.func @_actor_kernel(%arg0: i32, %arg1: memref<16x32xf32, #tpu.memory_space<vmem>>, %arg2: memref<16x1xf32, #tpu.memory_space<vmem>>, %arg3: memref<32x8xf32, #tpu.memory_space<vmem>>, %arg4: memref<8x8xf32, #tpu.memory_space<vmem>>, %arg5: memref<8x8xf32, #tpu.memory_space<vmem>>) attributes {dimension_semantics = [#tpu.dimension_semantics<parallel>], iteration_bounds = array<i64: 1>, scalar_prefetch = 0 : i64, scratch_operands = 0 : i64, tpu.core_type = #tpu.core_type<tc>, window_params = [{pipeline_mode = #tpu.pipeline_mode<synchronous>, transform_indices = @transform_0, window_bounds = array<i64: 16, 32>}, {pipeline_mode = #tpu.pipeline_mode<synchronous>, transform_indices = @transform_1, window_bounds = array<i64: 16, 1>}, {transform_indices = @transform_2, window_bounds = array<i64: 32, 8>}, {transform_indices = @transform_3, window_bounds = array<i64: 8, 8>}, {transform_indices = @transform_4, window_bounds = array<i64: 8, 8>}]} {
    %c0 = arith.constant 0 : index
    %c0_0 = arith.constant 0 : index
    %0 = vector.load %arg1[%c0, %c0_0] : memref<16x32xf32, #tpu.memory_space<vmem>>, vector<16x32xf32>
    %c0_1 = arith.constant 0 : index
    %c0_2 = arith.constant 0 : index
    %1 = vector.load %arg3[%c0_1, %c0_2] : memref<32x8xf32, #tpu.memory_space<vmem>>, vector<32x8xf32>
    %cst = arith.constant dense<0.000000e+00> : vector<16x8xf32>
    %2 = tpu.matmul %0, %1, %cst {dimension_numbers = #tpu.dot_dimension_numbers<[1], [0], [0], [1], [0, 0, 1, 1], [], []>} : vector<16x32xf32>, vector<32x8xf32>, vector<16x8xf32> -> vector<16x8xf32>
    %c0_3 = arith.constant 0 : index
    %c0_4 = arith.constant 0 : index
    %3 = vector.load %arg2[%c0_3, %c0_4] : memref<16x1xf32, #tpu.memory_space<vmem>>, vector<16x1xf32>
    %4 = vector.broadcast %3 : vector<16x1xf32> to vector<16x8xf32>
    %5 = arith.addf %2, %4 : vector<16x8xf32>
    %6 = vector.extract_strided_slice %5 {offsets = [0, 0], sizes = [8, 8], strides = [1, 1]} : vector<16x8xf32> to vector<8x8xf32>
    %7 = vector.extract_strided_slice %5 {offsets = [8, 0], sizes = [8, 8], strides = [1, 1]} : vector<16x8xf32> to vector<8x8xf32>
    %cst_5 = arith.constant 0.000000e+00 : f32
    %8 = vector.broadcast %cst_5 : f32 to vector<8x8xf32>
    %9 = arith.maximumf %7, %8 : vector<8x8xf32>
    %10 = vector.broadcast %cst_5 : f32 to vector<8x8xf32>
    %11 = arith.subf %7, %10 : vector<8x8xf32>
    %12 = arith.cmpf one, %11, %11 : vector<8x8xf32>
    %13 = vector.broadcast %cst_5 : f32 to vector<8x8xf32>
    %14 = arith.addf %7, %13 : vector<8x8xf32>
    %15 = math.absf %11 : vector<8x8xf32>
    %cst_6 = arith.constant 0.000000e+00 : f32
    %16 = vector.broadcast %cst_6 : f32 to vector<8x8xf32>
    %17 = arith.subf %16, %15 : vector<8x8xf32>
    %18 = math.exp %17 : vector<8x8xf32>
    %19 = math.log1p %18 : vector<8x8xf32>
    %20 = arith.addf %9, %19 : vector<8x8xf32>
    %21 = arith.select %12, %14, %20 : vector<8x8xi1>, vector<8x8xf32>
    %c0_7 = arith.constant 0 : index
    %c0_8 = arith.constant 0 : index
    %22 = vector.load %arg4[%c0_7, %c0_8] : memref<8x8xf32, #tpu.memory_space<vmem>>, vector<8x8xf32>
    %23 = arith.mulf %21, %22 : vector<8x8xf32>
    %24 = arith.addf %6, %23 : vector<8x8xf32>
    %c0_9 = arith.constant 0 : index
    %c0_10 = arith.constant 0 : index
    %25 = vector.load %arg5[%c0_9, %c0_10] : memref<8x8xf32, #tpu.memory_space<vmem>>, vector<8x8xf32>
    tpu.vector_store %arg5[%c0_9, %c0_10], %24 {strides = array<i32>} : memref<8x8xf32, #tpu.memory_space<vmem>>, vector<8x8xf32>,
    return
  }
  func.func @transform_0(%arg0: i32) -> (i32, i32) {
    %c0_i32 = arith.constant 0 : i32
    %c0_i32_0 = arith.constant 0 : i32
    %c0_i32_1 = arith.constant 0 : i32
    return %c0_i32, %c0_i32_0 : i32, i32
  }
  func.func @transform_1(%arg0: i32) -> (i32, i32) {
    %c0_i32 = arith.constant 0 : i32
    %c0_i32_0 = arith.constant 0 : i32
    %c0_i32_1 = arith.constant 0 : i32
    return %c0_i32, %c0_i32_0 : i32, i32
  }
  func.func @transform_2(%arg0: i32) -> (i32, i32) {
    %c0_i32 = arith.constant 0 : i32
    %c0_i32_0 = arith.constant 0 : i32
    return %c0_i32, %arg0 : i32, i32
  }
  func.func @transform_3(%arg0: i32) -> (i32, i32) {
    %c0_i32 = arith.constant 0 : i32
    %c0_i32_0 = arith.constant 0 : i32
    return %c0_i32, %arg0 : i32, i32
  }
  func.func @transform_4(%arg0: i32) -> (i32, i32) {
    %c0_i32 = arith.constant 0 : i32
    %c0_i32_0 = arith.constant 0 : i32
    return %c0_i32, %arg0 : i32, i32
  }
}

</mosaic_0001>

<bundles_post_ra>
// kernel: proximal_actor_forward.1
= control target key start
LH: loop header
LB: loop body
LE: loop exit
PB: predicated region body
PF: predicated region fallthrough
CT: control target
= control target key end

     0   :  { %vm35_vm0 = vcmask 261120   ;;  %v177_v3 = vmov 0   ;;  %vm138_vm3 = vcmask 64512   ;;  %s235_s2 = inlined_call_operand.vmem [shape: f32[32,8], index: 2, kind: input, shape index: {}]   ;;  %s236_s0 = inlined_call_operand.vmem [shape: f32[16,32], index: 0, kind: input, shape index: {}]   ;;  %s237_s1 = inlined_call_operand.vmem [shape: f32[16,1], index: 1, kind: input, shape index: {}]   ;;  %s238_s3 = inlined_call_operand.vmem [shape: f32[8,8], index: 3, kind: input, shape index: {}]   ;;  %s239_s4 = inlined_call_operand.vmem [shape: f32[8,8], index: 4, kind: output, shape index: {}]  }
   0x1   :  { %v19_v0 = vld [vmem:[%s235_s2] sm:$0xff]  ;;  %v20_v1 = vld [vmem:[%s235_s2 + $0x8] sm:$0xff]  ;;  %v21_v2 = vld [vmem:[%s235_s2 + $0x10] sm:$0xff]  ;;  %172 = vset.pattern.permute.xlu0 %v177_v3 }
   0x2   :  { %v163_v4 = vpack.c.bf16 %v20_v1, %v19_v0  ;;  %v22_v5 = vld [vmem:[%s235_s2 + $0x18] sm:$0xff]  ;;  %v17_v6 = vld [vmem:[%s236_s0] sm:$0xff]  ;;  %v24_v8 = vld [vmem:[%s237_s1 + $0x8] sm:$0xff] }
   0x3   :  { %v167_v7 = vpack.c.bf16 %v22_v5, %v21_v2  ;;  %160 = vmatprep.mubr.msk.f32.mxu0 %vm35_vm0, %v17_v6  ;;  %32 = vperm.xlu0 %172, %v24_v8   ;;  %v23_v9 = vld [vmem:[%s237_s1] sm:$0xff]  ;;  %v18_v10 = vld [vmem:[%s236_s0 + $0x8] sm:$0xff] }
   0x4   :  { %164 = vmatprep.subr.bf16.mxu0 %v163_v4  ;;  %v135_v30 = vld [vmem:[%s238_s3] sm:$0xff] }
   0x5   :  { %166 = vmatpush3.bf16.msra.mxu0 %v163_v4 }
   0x6   :  { %168 = vmatprep.subr.bf16.mxu0 %v167_v7 }
   0x7   :  { %27 = vperm.xlu0 %172, %v23_v9  }
   0x9   :  { %170 = vmatpush3.bf16.msra.mxu0 %v167_v7 }
   0xc   :  { %161 = vmatmul.mubr.msk.f32.vlgmr.msra.gmra.mrb[0].mxu0 %vm35_vm0, %v18_v10 }
  0x82   :  { %v33_v11 = vpop.permute.xlu0 %32 }
  0x86   :  { %v28_v28 = vpop.permute.xlu0 %27 }
  0xdf   :  { %v162_v12 = vpop.f32.mrb[0].mxu0 }
  0xe0   :  { %v114_v13 = vadd.f32 %v162_v12, %v33_v11  ;;  %v108_v14 = vpop.f32.mrb[1].mxu0 }
  0xe1   :  { %v109_v32 = vadd.f32 %v108_v14, %v28_v28 }
  0xe2   :  { %v120_v15 = vand.u32 2147483647, %v114_v13  ;;  %v117_v26 = vmax.f32 %v114_v13, 0.0  ;;  %vm118_vm2 = vcmp.ne.f32.partialorder %v114_v13, %v114_v13 }
  0xe4   :  { %v121_v16 = vsub.f32 0.0, %v120_v15 }
  0xe6   :  { %v122_v17 = vmul.f32 1.442695, %v121_v16 }
  0xe8   :  { %173 = vpow2.f32 %v122_v17 }
  0xf2   :  { %v174_v18 = vpop.eup %173 }
  0xf3   :  { %v124_v19 = vadd.f32 1.0, %v174_v18  ;;  %v127_v20 = vmul.f32 -0.5, %v174_v18  ;;  %v130_v22 = vand.u32 2147483647, %v174_v18 }
  0xf5   :  { %175 = vlog2.f32 %v124_v19  ;;  %v128_v21 = vadd.f32 1.0, %v127_v20  ;;  %vm131_vm1 = vcmp.lt.f32.partialorder %v130_v22, 0.0004427343 }
  0xf7   :  { %v129_v25 = vmul.f32 %v174_v18, %v128_v21 }
  0xff   :  { %v176_v23 = vpop.eup %175 }
 0x100   :  { %v126_v24 = vmul.f32 0.6931472, %v176_v23 }
 0x102   :  { %v132_v27 = vsel %vm131_vm1, %v129_v25, %v126_v24 }
 0x103   :  { %v133_v29 = vadd.f32 %v132_v27, %v117_v26 }
 0x105   :  { %v134_v31 = vsel %vm118_vm2, %v114_v13, %v133_v29 }
 0x106   :  { %v136_v33 = vmul.f32 %v135_v30, %v134_v31 }
 0x108   :  { %v137_v34 = vadd.f32 %v136_v33, %v109_v32 }
 0x10a   :  { %139 = vst.msk [vmem:[%s239_s4] sm:$0xff] %vm138_vm3, %v137_v34 }

</bundles_post_ra>
